<compile_context>
chip_gen: v7x
topology: tpu7x:2x2x1
jax: 0.10.0
libtpu: 0.0.40
codegen_flags: <defaults>
</compile_context>

<pallas_src>
import functools

import jax
import jax.numpy as jnp
from jax.experimental import pallas as pl
from jax.experimental.pallas import tpu as pltpu


# ---------------------------------------------------------------------------
# Kernel
# ---------------------------------------------------------------------------
def mlp_kernel(x_ref, w1_ref, b1_ref, w2_ref, b2_ref, o_ref):
    # fc1: x @ W1 + b1   (f32 accumulation on the MXU)
    h = jnp.dot(x_ref[...], w1_ref[...], preferred_element_type=jnp.float32)
    h = h + b1_ref[...].astype(jnp.float32)          # (1, D_hid) broadcasts over rows
    # fc2: h @ W2 + b2   (no nonlinearity in the reference module)
    y = jnp.dot(h.astype(w2_ref.dtype), w2_ref[...],
                preferred_element_type=jnp.float32)
    y = y + b2_ref[...].astype(jnp.float32)
    o_ref[...] = y.astype(o_ref.dtype)


# ---------------------------------------------------------------------------
# Wrapper
# ---------------------------------------------------------------------------
def _round_up(x: int, m: int) -> int:
    return (x + m - 1) // m * m


@functools.partial(jax.jit, static_argnames=("max_tile_b",))
def mlp_forward(x, w1, b1, w2, b2, *, max_tile_b: int = 512):
    """x: (B, D_in); w1: (D_in, D_hid); b1: (D_hid,); w2: (D_hid, D_out); b2: (D_out,).

    Weights are stored pre-transposed relative to PyTorch's (out, in) layout so
    the kernel can matmul directly.
    """
    B, D_in = x.shape
    D_hid = w1.shape[1]
    D_out = w2.shape[1]
    dtype = x.dtype
    itemsize = jnp.dtype(dtype).itemsize

    # --- lane / sublane friendly padded shapes --------------------------------
    LANE = 128
    SUBLANE = 8 if itemsize == 4 else 16
    d_in_p = _round_up(D_in, LANE)
    d_hid_p = _round_up(D_hid, LANE)
    d_out_p = _round_up(D_out, LANE)

    tile_b = min(_round_up(B, SUBLANE), max_tile_b)
    tile_b = _round_up(tile_b, SUBLANE)
    b_pad = _round_up(B, tile_b)
    num_b_tiles = b_pad // tile_b

    # Zero-padding is exact for an affine map: padded x columns hit zero weight
    # rows, padded hidden/output columns get zero bias, and padded batch rows /
    # output columns are sliced off below.
    x_p = jnp.pad(x, ((0, b_pad - B), (0, d_in_p - D_in)))
    w1_p = jnp.pad(w1, ((0, d_in_p - D_in), (0, d_hid_p - D_hid)))
    w2_p = jnp.pad(w2, ((0, d_hid_p - D_hid), (0, d_out_p - D_out)))
    b1_p = jnp.pad(b1.reshape(1, -1), ((0, 0), (0, d_hid_p - D_hid)))
    b2_p = jnp.pad(b2.reshape(1, -1), ((0, 0), (0, d_out_p - D_out)))

    # --- VMEM budget: resident weights/biases + double-buffered x/out tiles ----
    resident = (d_in_p * d_hid_p + d_hid_p * d_out_p) * itemsize \
             + 8 * (d_hid_p + d_out_p) * itemsize
    streamed = 2 * tile_b * (d_in_p + d_out_p) * itemsize      # double-buffered
    scratch = tile_b * d_hid_p * 4                              # f32 intermediate h
    vmem_bytes = int(1.5 * (resident + streamed + scratch))
    vmem_bytes = min(max(vmem_bytes, 16 * 1024 * 1024), 64 * 1024 * 1024)

    flops = 2 * b_pad * (d_in_p * d_hid_p + d_hid_p * d_out_p)
    bytes_accessed = (x_p.size + w1_p.size + w2_p.size + b1_p.size + b2_p.size
                      + b_pad * d_out_p) * itemsize

    out_p = pl.pallas_call(
        mlp_kernel,
        out_shape=jax.ShapeDtypeStruct((b_pad, d_out_p), dtype),
        grid=(num_b_tiles,),
        in_specs=[
            pl.BlockSpec((tile_b, d_in_p), lambda i: (i, 0)),   # x tile streams
            pl.BlockSpec((d_in_p, d_hid_p), lambda i: (0, 0)),  # W1 resident
            pl.BlockSpec((1, d_hid_p), lambda i: (0, 0)),       # b1 resident
            pl.BlockSpec((d_hid_p, d_out_p), lambda i: (0, 0)), # W2 resident
            pl.BlockSpec((1, d_out_p), lambda i: (0, 0)),       # b2 resident
        ],
        out_specs=pl.BlockSpec((tile_b, d_out_p), lambda i: (i, 0)),
        compiler_params=pltpu.CompilerParams(
            dimension_semantics=("parallel",),   # independent batch tiles
            vmem_limit_bytes=vmem_bytes,
        ),
        cost_estimate=pl.CostEstimate(
            flops=flops, transcendentals=0, bytes_accessed=bytes_accessed),
    )(x_p, w1_p, b1_p, w2_p, b2_p)

    return out_p[:B, :D_out]


# ---------------------------------------------------------------------------
# Parameter init (matches MLP._initialize_weights: weight ~ N(0, 0.01), bias 0)
# ---------------------------------------------------------------------------
def init_mlp_params(key, input_dim, hidden_dim, output_dim, dtype=jnp.float32):
    k1, k2 = jax.random.split(key)
    w1 = (0.01 * jax.random.normal(k1, (input_dim, hidden_dim))).astype(dtype)
    b1 = jnp.zeros((hidden_dim,), dtype)
    w2 = (0.01 * jax.random.normal(k2, (hidden_dim, output_dim))).astype(dtype)
    b2 = jnp.zeros((output_dim,), dtype)
    return w1, b1, w2, b2


if __name__ == "__main__":
    key = jax.random.PRNGKey(0)
    kx, kp = jax.random.split(key)

    batch, input_dim, hidden_dim, output_dim = 8, 32, 64, 16
    x = jax.random.normal(kx, (batch, input_dim), dtype=jnp.float32)
    w1, b1, w2, b2 = init_mlp_params(kp, input_dim, hidden_dim, output_dim)

    out = mlp_forward(x, w1, b1, w2, b2)
    out = jax.block_until_ready(out)

    # Reference check against plain-JAX forward pass.
    ref = (x @ w1 + b1) @ w2 + b2
    assert out.shape == (batch, output_dim)
    assert jnp.allclose(out, ref, atol=1e-5, rtol=1e-5)

    print("KERNEL_OK")
</pallas_src>

<mosaic_0001>
module attributes {stable_mosaic.version = 11 : i64} {
  func.func @mlp_kernel(%arg0: i32, %arg1: memref<8x128xf32, #tpu.memory_space<vmem>>, %arg2: memref<128x128xf32, #tpu.memory_space<vmem>>, %arg3: memref<1x128xf32, #tpu.memory_space<vmem>>, %arg4: memref<128x128xf32, #tpu.memory_space<vmem>>, %arg5: memref<1x128xf32, #tpu.memory_space<vmem>>, %arg6: memref<8x128xf32, #tpu.memory_space<vmem>>) attributes {dimension_semantics = [#tpu.dimension_semantics<parallel>], iteration_bounds = array<i64: 1>, scalar_prefetch = 0 : i64, scratch_operands = 0 : i64, tpu.core_type = #tpu.core_type<tc>, window_params = [{transform_indices = @transform_0, window_bounds = array<i64: 8, 128>}, {pipeline_mode = #tpu.pipeline_mode<synchronous>, transform_indices = @transform_1, window_bounds = array<i64: 128, 128>}, {pipeline_mode = #tpu.pipeline_mode<synchronous>, transform_indices = @transform_2, window_bounds = array<i64: 1, 128>}, {pipeline_mode = #tpu.pipeline_mode<synchronous>, transform_indices = @transform_3, window_bounds = array<i64: 128, 128>}, {pipeline_mode = #tpu.pipeline_mode<synchronous>, transform_indices = @transform_4, window_bounds = array<i64: 1, 128>}, {transform_indices = @transform_5, window_bounds = array<i64: 8, 128>}]} {
    %c0 = arith.constant 0 : index
    %c0_0 = arith.constant 0 : index
    %0 = vector.load %arg1[%c0, %c0_0] : memref<8x128xf32, #tpu.memory_space<vmem>>, vector<8x128xf32>
    %c0_1 = arith.constant 0 : index
    %c0_2 = arith.constant 0 : index
    %1 = vector.load %arg2[%c0_1, %c0_2] : memref<128x128xf32, #tpu.memory_space<vmem>>, vector<128x128xf32>
    %cst = arith.constant dense<0.000000e+00> : vector<8x128xf32>
    %2 = tpu.matmul %0, %1, %cst {dimension_numbers = #tpu.dot_dimension_numbers<[1], [0], [0], [1], [0, 0, 1, 1], [], []>} : vector<8x128xf32>, vector<128x128xf32>, vector<8x128xf32> -> vector<8x128xf32>
    %c0_3 = arith.constant 0 : index
    %c0_4 = arith.constant 0 : index
    %3 = vector.load %arg3[%c0_3, %c0_4] : memref<1x128xf32, #tpu.memory_space<vmem>>, vector<1x128xf32>
    %4 = vector.broadcast %3 : vector<1x128xf32> to vector<8x128xf32>
    %5 = arith.addf %2, %4 : vector<8x128xf32>
    %c0_5 = arith.constant 0 : index
    %c0_6 = arith.constant 0 : index
    %6 = vector.load %arg4[%c0_5, %c0_6] : memref<128x128xf32, #tpu.memory_space<vmem>>, vector<128x128xf32>
    %cst_7 = arith.constant dense<0.000000e+00> : vector<8x128xf32>
    %7 = tpu.matmul %5, %6, %cst_7 {dimension_numbers = #tpu.dot_dimension_numbers<[1], [0], [0], [1], [0, 0, 1, 1], [], []>} : vector<8x128xf32>, vector<128x128xf32>, vector<8x128xf32> -> vector<8x128xf32>
    %c0_8 = arith.constant 0 : index
    %c0_9 = arith.constant 0 : index
    %8 = vector.load %arg5[%c0_8, %c0_9] : memref<1x128xf32, #tpu.memory_space<vmem>>, vector<1x128xf32>
    %9 = vector.broadcast %8 : vector<1x128xf32> to vector<8x128xf32>
    %10 = arith.addf %7, %9 : vector<8x128xf32>
    %c0_10 = arith.constant 0 : index
    %c0_11 = arith.constant 0 : index
    %11 = vector.load %arg6[%c0_10, %c0_11] : memref<8x128xf32, #tpu.memory_space<vmem>>, vector<8x128xf32>
    tpu.vector_store %arg6[%c0_10, %c0_11], %10 {strides = array<i32>} : memref<8x128xf32, #tpu.memory_space<vmem>>, vector<8x128xf32>,
    return
  }
  func.func @transform_0(%arg0: i32) -> (i32, i32) {
    %c0_i32 = arith.constant 0 : i32
    %c0_i32_0 = arith.constant 0 : i32
    return %arg0, %c0_i32 : i32, i32
  }
  func.func @transform_1(%arg0: i32) -> (i32, i32) {
    %c0_i32 = arith.constant 0 : i32
    %c0_i32_0 = arith.constant 0 : i32
    %c0_i32_1 = arith.constant 0 : i32
    return %c0_i32, %c0_i32_0 : i32, i32
  }
  func.func @transform_2(%arg0: i32) -> (i32, i32) {
    %c0_i32 = arith.constant 0 : i32
    %c0_i32_0 = arith.constant 0 : i32
    %c0_i32_1 = arith.constant 0 : i32
    return %c0_i32, %c0_i32_0 : i32, i32
  }
  func.func @transform_3(%arg0: i32) -> (i32, i32) {
    %c0_i32 = arith.constant 0 : i32
    %c0_i32_0 = arith.constant 0 : i32
    %c0_i32_1 = arith.constant 0 : i32
    return %c0_i32, %c0_i32_0 : i32, i32
  }
  func.func @transform_4(%arg0: i32) -> (i32, i32) {
    %c0_i32 = arith.constant 0 : i32
    %c0_i32_0 = arith.constant 0 : i32
    %c0_i32_1 = arith.constant 0 : i32
    return %c0_i32, %c0_i32_0 : i32, i32
  }
  func.func @transform_5(%arg0: i32) -> (i32, i32) {
    %c0_i32 = arith.constant 0 : i32
    %c0_i32_0 = arith.constant 0 : i32
    return %arg0, %c0_i32 : i32, i32
  }
}

</mosaic_0001>

<bundles_post_ra>
// kernel: mlp_forward.1
= control target key start
LH: loop header
LB: loop body
LE: loop exit
PB: predicated region body
PF: predicated region fallthrough
CT: control target
= control target key end

     0   :  { %v405_v3 = vmov 0.0|0.0   ;;  %vm406_vm0 = vmmov 0   ;;  %v407_v6 = vmov 0.0   ;;  %s572_s0 = inlined_call_operand.vmem [shape: f32[8,128], index: 0, kind: input, shape index: {}]   ;;  %s573_s1 = inlined_call_operand.vmem [shape: f32[128,128], index: 1, kind: input, shape index: {}]   ;;  %s574_s2 = inlined_call_operand.vmem [shape: f32[1,128], index: 2, kind: input, shape index: {}]   ;;  %s575_s3 = inlined_call_operand.vmem [shape: f32[128,128], index: 3, kind: input, shape index: {}]   ;;  %s576_s4 = inlined_call_operand.vmem [shape: f32[1,128], index: 4, kind: input, shape index: {}]   ;;  %s577_s5 = inlined_call_operand.hbm [shape: f32[8,128], index: 5, kind: output, shape index: {}]  }
   0x1   :  { %v22_v0 = vld [vmem:[%s573_s1] sm:$0xff]  ;;  %v23_v1 = vld [vmem:[%s573_s1 + $0x8] sm:$0xff]  ;;  %v24_v2 = vld [vmem:[%s573_s1 + $0x10] sm:$0xff]  ;;  %329 = vmatprep.subr.bf16.mxu0 %v405_v3  ;;  %291 = vmatprep.mubr.msk.f32.mxu0 %vm406_vm0, %v407_v6 }
   0x2   :  { %v330_v4 = vpack.c.bf16 %v23_v1, %v22_v0  ;;  %v25_v5 = vld [vmem:[%s573_s1 + $0x18] sm:$0xff]  ;;  %353 = vmatprep.subr.bf16.mxu1 %v405_v3  ;;  %326 = vmatprep.mubr.msk.f32.mxu1 %vm406_vm0, %v407_v6  ;;  %v26_v8 = vld [vmem:[%s573_s1 + $0x20] sm:$0xff]  ;;  %v27_v9 = vld [vmem:[%s573_s1 + $0x28] sm:$0xff] }
   0x3   :  { %v333_v7 = vpack.c.bf16 %v25_v5, %v24_v2  ;;  %v115_v10 = vld [vmem:[%s575_s3] sm:$0xff]  ;;  %v116_v11 = vld [vmem:[%s575_s3 + $0x8] sm:$0xff]  ;;  %v117_v12 = vld [vmem:[%s575_s3 + $0x10] sm:$0xff]  ;;  %v336_v14 = vpack.c.bf16 %v27_v9, %v26_v8 }
   0x4   :  { %331 = vmatpush3.bf16.msra.mxu0 %v330_v4  ;;  %v118_v13 = vld [vmem:[%s575_s3 + $0x18] sm:$0xff]  ;;  %v354_v15 = vpack.c.bf16 %v116_v11, %v115_v10  ;;  %v28_v16 = vld [vmem:[%s573_s1 + $0x30] sm:$0xff]  ;;  %v119_v19 = vld [vmem:[%s575_s3 + $0x20] sm:$0xff] }
   0x5   :  { %332 = vmatprep.subr.bf16.mxu0 %v405_v3  ;;  %v29_v17 = vld [vmem:[%s573_s1 + $0x38] sm:$0xff]  ;;  %v357_v18 = vpack.c.bf16 %v118_v13, %v117_v12  ;;  %v120_v20 = vld [vmem:[%s575_s3 + $0x28] sm:$0xff] }
   0x6   :  { %355 = vmatpush3.bf16.msra.mxu1 %v354_v15 }
   0x7   :  { %356 = vmatprep.subr.bf16.mxu1 %v405_v3 }
   0x8   :  { %334 = vmatpush3.bf16.msra.mxu0 %v333_v7 }
   0x9   :  { %335 = vmatprep.subr.bf16.mxu0 %v405_v3 }
   0xa   :  { %10 = vsyncpa [#allocation3], 0  ;;  %v339_v21 = vpack.c.bf16 %v29_v17, %v28_v16  ;;  %v30_v22 = vld [vmem:[%s573_s1 + $0x40] sm:$0xff]  ;;  %v31_v23 = vld [vmem:[%s573_s1 + $0x48] sm:$0xff]  ;;  %358 = vmatpush3.bf16.msra.mxu1 %v357_v18  ;;  %v360_v24 = vpack.c.bf16 %v120_v20, %v119_v19  ;;  %s408_s11 = smov [#allocation2]  }
   0xb   :  { %359 = vmatprep.subr.bf16.mxu1 %v405_v3  ;;  %v121_v25 = vld [vmem:[%s575_s3 + $0x30] sm:$0xff]  ;;  %v122_v26 = vld [vmem:[%s575_s3 + $0x38] sm:$0xff]  ;;  %v342_v27 = vpack.c.bf16 %v31_v23, %v30_v22  ;;  %v123_v31 = vld [vmem:[%s575_s3 + $0x40] sm:$0xff]  ;;  %s215_s12 = sshll.u32 %s408_s11, 4  ;;  %s216_s12 = int_to_ptr.vmem [resolvable:$true] %s215_s12 }
   0xc   :  { %337 = vmatpush3.bf16.msra.mxu0 %v336_v14  ;;  %v32_v28 = vld [vmem:[%s573_s1 + $0x50] sm:$0xff]  ;;  %v33_v29 = vld [vmem:[%s573_s1 + $0x58] sm:$0xff]  ;;  %v363_v30 = vpack.c.bf16 %v122_v26, %v121_v25  ;;  %v124_v32 = vld [vmem:[%s575_s3 + $0x48] sm:$0xff]  ;;  %p386_p1 = scmp.lt.s32.totalorder %s216_s12, %s216_s12 }
   0xd   :  { %338 = vmatprep.subr.bf16.mxu0 %v405_v3  ;;  %v345_v33 = vpack.c.bf16 %v33_v29, %v32_v28  ;;  %v34_v34 = vld [vmem:[%s573_s1 + $0x60] sm:$0xff]  ;;  %v35_v35 = vld [vmem:[%s573_s1 + $0x68] sm:$0xff]  ;;  %v366_v36 = vpack.c.bf16 %v124_v32, %v123_v31  ;;  %v125_v37 = vld [vmem:[%s575_s3 + $0x50] sm:$0xff] }
   0xe   :  { %361 = vmatpush3.bf16.msra.mxu1 %v360_v24  ;;  %v126_v38 = vld [vmem:[%s575_s3 + $0x58] sm:$0xff]  ;;  %v348_v39 = vpack.c.bf16 %v35_v35, %v34_v34  ;;  %v36_v40 = vld [vmem:[%s573_s1 + $0x70] sm:$0xff]  ;;  %v127_v43 = vld [vmem:[%s575_s3 + $0x60] sm:$0xff] }
   0xf   :  { %362 = vmatprep.subr.bf16.mxu1 %v405_v3  ;;  %v37_v41 = vld [vmem:[%s573_s1 + $0x78] sm:$0xff]  ;;  %v369_v42 = vpack.c.bf16 %v126_v38, %v125_v37  ;;  %v128_v44 = vld [vmem:[%s575_s3 + $0x68] sm:$0xff]  ;;  %v21_v47 = vld [vmem:[%s572_s0] sm:$0xff] }
  0x10   :  { %340 = vmatpush3.bf16.msra.mxu0 %v339_v21  ;;  %v351_v45 = vpack.c.bf16 %v37_v41, %v36_v40  ;;  %v372_v46 = vpack.c.bf16 %v128_v44, %v127_v43  ;;  %v129_v48 = vld [vmem:[%s575_s3 + $0x70] sm:$0xff]  ;;  %v130_v49 = vld [vmem:[%s575_s3 + $0x78] sm:$0xff]  ;;  %v223_v51 = vld [vmem:[%s574_s2] ss:$0 sm:$0xff]  ;;  %s381_s3 = scalar_lea.vmem %s216_s12, 128 }
  0x11   :  { %341 = vmatprep.subr.bf16.mxu0 %v405_v3  ;;  %v375_v50 = vpack.c.bf16 %v130_v49, %v129_v48  ;;  %v224_v55 = vld [vmem:[%s576_s4] ss:$0 sm:$0xff]  ;;  %p382_p0 = scmp.ne.s32.totalorder %s216_s12, %s381_s3  ;;  %p387_p2 = scmp.lt.s32.totalorder %s381_s3, %s381_s3 }
  0x12   :  { %364 = vmatpush3.bf16.msra.mxu1 %v363_v30 }
  0x13   :  { %365 = vmatprep.subr.bf16.mxu1 %v405_v3  ;;  %p388_p3 = por %p387_p2, %p386_p1 }
  0x14   :  { %343 = vmatpush3.bf16.msra.mxu0 %v342_v27 }
  0x15   :  { %344 = vmatprep.subr.bf16.mxu0 %v405_v3  ;;  %p389_p4 = pnand %p388_p3, %p382_p0 }
  0x16   :  { %367 = vmatpush3.bf16.msra.mxu1 %v366_v36 }
  0x17   :  { %368 = vmatprep.subr.bf16.mxu1 %v405_v3 }
  0x18   :  { %346 = vmatpush3.bf16.msra.mxu0 %v345_v33 }
  0x19   :  { %347 = vmatprep.subr.bf16.mxu0 %v405_v3 }
  0x1a   :  { %370 = vmatpush3.bf16.msra.mxu1 %v369_v42 }
  0x1b   :  { %371 = vmatprep.subr.bf16.mxu1 %v405_v3 }
  0x1c   :  { %349 = vmatpush3.bf16.msra.mxu0 %v348_v39 }
  0x1d   :  { %350 = vmatprep.subr.bf16.mxu0 %v405_v3 }
  0x1e   :  { %373 = vmatpush3.bf16.msra.mxu1 %v372_v46 }
  0x1f   :  { %374 = vmatprep.subr.bf16.mxu1 %v405_v3 }
  0x20   :  { %352 = vmatpush3.bf16.msra.mxu0 %v351_v45 }
  0x22   :  { %376 = vmatpush3.bf16.msra.mxu1 %v375_v50 }
  0x23   :  { %292 = vmatmul.mubr.f32.vlgmr.msra.gmra.mrb[0].mxu0 %v21_v47 }
  0xf6   :  { %v111_v52 = vpop.f32.mrb[0].mxu0 }
  0xf7   :  { %v112_v53 = vadd.f32 %v223_v51, %v111_v52  ;;  %v293_v54 = vpop.f32.mrb[1].mxu0 }
  0xf9   :  { %327 = vmatmul.mubr.f32.vlgmr.msra.gmra.mrb[0].mxu1 %v112_v53 }
 0x1cc   :  { %v204_v56 = vpop.f32.mrb[0].mxu1 }
 0x1cd   :  { %v205_v57 = vadd.f32 %v224_v55, %v204_v56  ;;  %v328_v58 = vpop.f32.mrb[1].mxu1 }
 0x1cf   :  { %208 = vst [vmem:[#allocation2] sm:$0xff] %v205_v57 }
 0x1d0   :  { %392 = shalt.err (!%p389_p4)
}
 0x1d1   :  { %s393_s14 = scalar_lea.hbm %s577_s5, 128 }
 0x1d2   :  { %p394_p5 = scmp.ne.s32.totalorder %s577_s5, %s393_s14  ;;  %p397_p6 = scmp.lt.u32.totalorder %s393_s14, %s577_s5 }
 0x1d4   :  { %p399_p7 = pnand %p397_p6, %p394_p5 }
 0x1d6   :  { %402 = shalt.err (!%p399_p7)
}
 0x1d7   :  { %218 = dma.vmem_to_hbm [thread:$0]  %s216_s12, 128, %s577_s5, [#allocation3]  }
 0x1d8   :  { %403 = dma.done.wait [#allocation3], 128  }
 0x1d9   :  { %404 = vsyncadd [#allocation3], 4294967168 }
 0x1da   :  { %222 = vsyncpa [#allocation3], 1 }

</bundles_post_ra>
